<compile_context>
chip_gen: v6e
topology: v6e:2x2x1
jax: 0.10.0
libtpu: 0.0.40
codegen_flags: <defaults>
</compile_context>

<pallas_src>
import math
import jax
import jax.numpy as jnp
from jax.experimental import pallas as pl
from jax.experimental.pallas import tpu as pltpu

# ---- small config consistent with the BaichuanConfig fields used by the module ----
B = 2            # batch
S = 8            # q_len == kv_len (no past_key_value)
H = 32           # hidden_size
NH = 4           # num_attention_heads
D = H // NH      # head_dim
I = 64           # intermediate_size
EPS = 1e-6       # rms_norm_eps
INV_NORM = 1.0 / math.sqrt(D)
NEG_INF = float(jnp.finfo(jnp.float32).min)
MASK_BIAS = -1e30  # additive mask bias folded into alibi (exp -> 0, no NaN hazard)


# ------------------------- fused layer kernel (one batch element per grid step) -------------------------

def _layer_kernel(x_ref, bias_ref, wpack_ref, oproj_ref, wgu_ref, wd_ref, o_ref):
    f32 = jnp.float32
    x = x_ref[0].astype(f32)                               # (S, H)

    # ---- input RMSNorm (ln1 weight pre-folded into w_pack rows) ----
    var = jnp.mean(x * x, axis=-1, keepdims=True)
    hs = x * jax.lax.rsqrt(var + EPS)

    # ---- fused QKV projection: one lane-dense (S, 3H) matmul ----
    proj = jnp.dot(hs, wpack_ref[...], preferred_element_type=f32)     # (S, 3H)

    # ---- attention: static per-head loop, mask pre-folded into alibi bias ----
    # TODO(synk): at real sizes D=128 so per-head slices are 128-lane aligned; here the
    # sub-128 slices are tolerated since the whole proj row fits in one vreg.
    heads = []
    for h in range(NH):
        qh = proj[:, h * D:(h + 1) * D]                    # (S, D)
        kh = proj[:, H + h * D:H + (h + 1) * D]            # (S, D)
        vh = proj[:, 2 * H + h * D:2 * H + (h + 1) * D]    # (S, D)

        # baddbmm: bias + inv_norm * (q @ k^T); bias already carries the -1e30 mask
        sc = bias_ref[0, h].astype(f32) + INV_NORM * jnp.einsum(
            'qd,kd->qk', qh, kh, preferred_element_type=f32)           # (S, S)

        # softmax in f32; reciprocal goes to the EUP slot
        m = jnp.max(sc, axis=-1, keepdims=True)
        e = jnp.exp(sc - m)
        p = e * pl.reciprocal(jnp.sum(e, axis=-1, keepdims=True), approx=True)

        heads.append(jnp.dot(p, vh, preferred_element_type=f32))       # (S, D)

    # single o_proj matmul on the concatenated head outputs (one K=H MXU push)
    attn = jnp.concatenate(heads, axis=-1)                 # (S, H)
    attn_out = jnp.dot(attn, oproj_ref[...], preferred_element_type=f32)

    hidden = x + attn_out                                  # first residual

    # ---- post-attention RMSNorm (ln2 weight pre-folded into gate_up rows) ----
    var2 = jnp.mean(hidden * hidden, axis=-1, keepdims=True)
    h2 = hidden * jax.lax.rsqrt(var2 + EPS)

    # ---- SwiGLU MLP: gate & up fused in one (H, 2I) = 128-lane matmul ----
    gu = jnp.dot(h2, wgu_ref[...], preferred_element_type=f32)         # (S, 2I)
    g = gu[:, :I]
    u = gu[:, I:]
    act = g * jax.nn.sigmoid(g) * u                        # SiLU(gate) * up
    mlp_out = jnp.dot(act, wd_ref[...], preferred_element_type=f32)

    # TODO(synk): output last dim is 32 (< 128) -> masked vst; real-size version must keep
    # a lane-dense (multiple-of-128) output layout.
    o_ref[0] = (hidden + mlp_out).astype(o_ref.dtype)      # second residual


# ------------------------- layer forward wrapper -------------------------

def baichuan_layer(params, hidden_states, alibi, attention_mask):
    b, s, h = hidden_states.shape
    nh = attention_mask.shape[1]

    # Fold the causal/padding mask into the alibi bias once per call (additive -1e30).
    bias = jnp.where(attention_mask, MASK_BIAS,
                     alibi.reshape(b, nh, s, s)).astype(jnp.float32)   # (B, NH, S, S)

    # TODO(synk): at decode sizes, keep the folded weights resident across layer calls
    # (cross-call prefetch / P10) instead of re-DMAing them every pallas_call.
    return pl.pallas_call(
        _layer_kernel,
        out_shape=jax.ShapeDtypeStruct((b, s, h), hidden_states.dtype),
        grid=(b,),
        in_specs=[
            pl.BlockSpec((1, s, h), lambda i: (i, 0, 0)),              # x (per batch)
            pl.BlockSpec((1, nh, s, s), lambda i: (i, 0, 0, 0)),       # masked alibi bias
            pl.BlockSpec(params["w_pack_ln"].shape, lambda i: (0, 0)),  # weights: constant
            pl.BlockSpec(params["o_proj"].shape, lambda i: (0, 0)),     # block index ->
            pl.BlockSpec(params["gate_up_ln"].shape, lambda i: (0, 0)), # no re-DMA across
            pl.BlockSpec(params["down"].shape, lambda i: (0, 0)),       # grid steps
        ],
        out_specs=pl.BlockSpec((1, s, h), lambda i: (i, 0, 0)),
        compiler_params=pltpu.CompilerParams(dimension_semantics=("parallel",)),
    )(
        hidden_states,
        bias,
        params["w_pack_ln"],     # (H, 3H)   diag(ln1_w) @ W_pack  (torch weight transposed)
        params["o_proj"],        # (H, H)
        params["gate_up_ln"],    # (H, 2I)   diag(ln2_w) @ [gate | up]
        params["down"],          # (I, H)
    )


# ------------------------- pure-JAX reference (unfolded weights, torch semantics) -------------------------

def reference(params, x, alibi, mask_bool):
    def rms(y, w):
        v = jnp.mean(y.astype(jnp.float32) ** 2, -1, keepdims=True)
        return (w * (y * jax.lax.rsqrt(v + EPS))).astype(y.dtype)

    hs = rms(x, params["ln1_w"])
    proj = (hs @ params["w_pack"]).reshape(B, S, 3, NH, D)
    q = proj[:, :, 0].transpose(0, 2, 1, 3).reshape(B * NH, S, D)
    k = proj[:, :, 1].transpose(0, 2, 3, 1).reshape(B * NH, D, S)
    v = proj[:, :, 2].transpose(0, 2, 1, 3).reshape(B * NH, S, D)
    scores = alibi + INV_NORM * jnp.einsum("bsd,bdk->bsk", q, k)
    scores = jnp.where(mask_bool.reshape(B * NH, S, S), NEG_INF, scores)
    probs = jax.nn.softmax(scores, axis=-1)
    attn = jnp.einsum("bqk,bkd->bqd", probs, v)
    attn = attn.reshape(B, NH, S, D).transpose(0, 2, 1, 3).reshape(B, S, H)
    hidden = x + attn @ params["o_proj"]
    h2 = rms(hidden, params["ln2_w"])
    g = h2 @ params["gate"]
    u = h2 @ params["up"]
    return hidden + (jax.nn.silu(g) * u) @ params["down"]


# ------------------------- main -------------------------

if __name__ == "__main__":
    key = jax.random.PRNGKey(0)
    ks = jax.random.split(key, 10)
    scale = 0.05

    # weights stored as (in, out), i.e. torch Linear weight already transposed
    gate = scale * jax.random.normal(ks[2], (H, I), jnp.float32)
    up = scale * jax.random.normal(ks[3], (H, I), jnp.float32)
    w_pack = scale * jax.random.normal(ks[0], (H, 3 * H), jnp.float32)
    ln1_w = 1.0 + 0.1 * jax.random.normal(ks[6], (H,), jnp.float32)
    ln2_w = 1.0 + 0.1 * jax.random.normal(ks[7], (H,), jnp.float32)

    params = {
        "ln1_w": ln1_w,
        "ln2_w": ln2_w,
        "w_pack": w_pack,
        "o_proj": scale * jax.random.normal(ks[1], (H, H), jnp.float32),
        "gate": gate,
        "up": up,
        "down": scale * jax.random.normal(ks[4], (I, H), jnp.float32),
        # offline folds (done once at model-load time in a real deployment):
        "w_pack_ln": ln1_w[:, None] * w_pack,                            # diag(ln1) @ W_pack
        "gate_up_ln": ln2_w[:, None] * jnp.concatenate([gate, up], 1),   # diag(ln2) @ [g|u]
    }

    hidden_states = jax.random.normal(ks[5], (B, S, H), jnp.float32)

    # alibi bias: slope_h * (j - i), shape (B*NH, S, S)
    slopes = 2.0 ** (-8.0 * (jnp.arange(NH, dtype=jnp.float32) + 1) / NH)
    rel = (jnp.arange(S)[None, :] - jnp.arange(S)[:, None]).astype(jnp.float32)
    alibi = slopes[:, None, None] * rel[None]             # (NH, S, S)
    alibi = jnp.tile(alibi, (B, 1, 1))                    # (B*NH, S, S)

    # causal boolean mask, True = masked
    causal = jnp.arange(S)[None, :] > jnp.arange(S)[:, None]
    attention_mask = jnp.broadcast_to(causal[None, None], (B, NH, S, S))

    out = baichuan_layer(params, hidden_states, alibi, attention_mask)
    out = jax.block_until_ready(out)

    ref = reference(params, hidden_states, alibi, attention_mask)
    assert out.shape == (B, S, H)
    assert jnp.allclose(out, ref, rtol=1e-3, atol=1e-3), "mismatch vs pure-JAX reference"

    print("KERNEL_OK")
</pallas_src>

<mosaic_0001>
module attributes {stable_mosaic.version = 11 : i64} {
  func.func @_layer_kernel(%arg0: i32, %arg1: memref<1x8x32xf32, #tpu.memory_space<vmem>>, %arg2: memref<1x4x8x8xf32, #tpu.memory_space<vmem>>, %arg3: memref<32x96xf32, #tpu.memory_space<vmem>>, %arg4: memref<32x32xf32, #tpu.memory_space<vmem>>, %arg5: memref<32x128xf32, #tpu.memory_space<vmem>>, %arg6: memref<64x32xf32, #tpu.memory_space<vmem>>, %arg7: memref<1x8x32xf32, #tpu.memory_space<vmem>>) attributes {dimension_semantics = [#tpu.dimension_semantics<parallel>], iteration_bounds = array<i64: 2>, scalar_prefetch = 0 : i64, scratch_operands = 0 : i64, tpu.core_type = #tpu.core_type<tc>, window_params = [{transform_indices = @transform_0, window_bounds = array<i64: 1, 8, 32>}, {transform_indices = @transform_1, window_bounds = array<i64: 1, 4, 8, 8>}, {pipeline_mode = #tpu.pipeline_mode<synchronous>, transform_indices = @transform_2, window_bounds = array<i64: 32, 96>}, {pipeline_mode = #tpu.pipeline_mode<synchronous>, transform_indices = @transform_3, window_bounds = array<i64: 32, 32>}, {pipeline_mode = #tpu.pipeline_mode<synchronous>, transform_indices = @transform_4, window_bounds = array<i64: 32, 128>}, {pipeline_mode = #tpu.pipeline_mode<synchronous>, transform_indices = @transform_5, window_bounds = array<i64: 64, 32>}, {transform_indices = @transform_6, window_bounds = array<i64: 1, 8, 32>}]} {
    %c0 = arith.constant 0 : index
    %c0_0 = arith.constant 0 : index
    %c0_1 = arith.constant 0 : index
    %0 = vector.load %arg1[%c0, %c0_0, %c0_1] : memref<1x8x32xf32, #tpu.memory_space<vmem>>, vector<1x8x32xf32>
    %1 = vector.shape_cast %0 : vector<1x8x32xf32> to vector<8x32xf32>
    %2 = arith.mulf %1, %1 : vector<8x32xf32>
    %cst = arith.constant dense<0.000000e+00> : vector<8xf32>
    %3 = vector.multi_reduction <add>, %2, %cst [1] : vector<8x32xf32> to vector<8xf32>
    %4 = vector.shape_cast %3 : vector<8xf32> to vector<8x1xf32>
    %cst_2 = arith.constant 3.200000e+01 : f32
    %5 = vector.broadcast %cst_2 : f32 to vector<8x1xf32>
    %6 = arith.divf %4, %5 : vector<8x1xf32>
    %cst_3 = arith.constant 9.99999997E-7 : f32
    %7 = vector.broadcast %cst_3 : f32 to vector<8x1xf32>
    %8 = arith.addf %6, %7 : vector<8x1xf32>
    %9 = math.rsqrt %8 : vector<8x1xf32>
    %10 = vector.broadcast %9 : vector<8x1xf32> to vector<8x32xf32>
    %11 = arith.mulf %1, %10 : vector<8x32xf32>
    %c0_4 = arith.constant 0 : index
    %c0_5 = arith.constant 0 : index
    %12 = vector.load %arg3[%c0_4, %c0_5] : memref<32x96xf32, #tpu.memory_space<vmem>>, vector<32x96xf32>
    %cst_6 = arith.constant dense<0.000000e+00> : vector<8x96xf32>
    %13 = tpu.matmul %11, %12, %cst_6 {dimension_numbers = #tpu.dot_dimension_numbers<[1], [0], [0], [1], [0, 0, 1, 1], [], []>} : vector<8x32xf32>, vector<32x96xf32>, vector<8x96xf32> -> vector<8x96xf32>
    %14 = vector.extract_strided_slice %13 {offsets = [0, 0], sizes = [8, 8], strides = [1, 1]} : vector<8x96xf32> to vector<8x8xf32>
    %15 = vector.extract_strided_slice %13 {offsets = [0, 32], sizes = [8, 8], strides = [1, 1]} : vector<8x96xf32> to vector<8x8xf32>
    %16 = vector.extract_strided_slice %13 {offsets = [0, 64], sizes = [8, 8], strides = [1, 1]} : vector<8x96xf32> to vector<8x8xf32>
    %c0_7 = arith.constant 0 : index
    %c0_8 = arith.constant 0 : index
    %c0_9 = arith.constant 0 : index
    %c0_10 = arith.constant 0 : index
    %17 = vector.load %arg2[%c0_7, %c0_8, %c0_9, %c0_10] : memref<1x4x8x8xf32, #tpu.memory_space<vmem>>, vector<1x1x8x8xf32>
    %18 = vector.shape_cast %17 : vector<1x1x8x8xf32> to vector<8x8xf32>
    "tpu.trace_start"() <{level = 10 : i32, message = "qd,kd->qk"}> : () -> ()
    %cst_11 = arith.constant dense<0.000000e+00> : vector<8x8xf32>
    %19 = tpu.matmul %14, %15, %cst_11 {dimension_numbers = #tpu.dot_dimension_numbers<[1], [1], [0], [0], [0, 0, 1, 0], [], []>} : vector<8x8xf32>, vector<8x8xf32>, vector<8x8xf32> -> vector<8x8xf32>
    "tpu.trace_stop"() : () -> ()
    %cst_12 = arith.constant 0.353553385 : f32
    %20 = vector.broadcast %cst_12 : f32 to vector<8x8xf32>
    %21 = arith.mulf %20, %19 : vector<8x8xf32>
    %22 = arith.addf %18, %21 : vector<8x8xf32>
    %cst_13 = arith.constant dense<0xFF800000> : vector<8xf32>
    %23 = vector.multi_reduction <maximumf>, %22, %cst_13 [1] : vector<8x8xf32> to vector<8xf32>
    %24 = vector.shape_cast %23 : vector<8xf32> to vector<8x1xf32>
    %25 = vector.broadcast %24 : vector<8x1xf32> to vector<8x8xf32>
    %26 = arith.subf %22, %25 : vector<8x8xf32>
    %27 = math.exp %26 : vector<8x8xf32>
    %cst_14 = arith.constant dense<0.000000e+00> : vector<8xf32>
    %28 = vector.multi_reduction <add>, %27, %cst_14 [1] : vector<8x8xf32> to vector<8xf32>
    %29 = vector.shape_cast %28 : vector<8xf32> to vector<8x1xf32>
    %30 = tpu.reciprocal %29 {approx = true} : vector<8x1xf32> -> vector<8x1xf32>
    %31 = vector.broadcast %30 : vector<8x1xf32> to vector<8x8xf32>
    %32 = arith.mulf %27, %31 : vector<8x8xf32>
    %cst_15 = arith.constant dense<0.000000e+00> : vector<8x8xf32>
    %33 = tpu.matmul %32, %16, %cst_15 {dimension_numbers = #tpu.dot_dimension_numbers<[1], [0], [0], [1], [0, 0, 1, 1], [], []>} : vector<8x8xf32>, vector<8x8xf32>, vector<8x8xf32> -> vector<8x8xf32>
    %34 = vector.extract_strided_slice %13 {offsets = [0, 8], sizes = [8, 8], strides = [1, 1]} : vector<8x96xf32> to vector<8x8xf32>
    %35 = vector.extract_strided_slice %13 {offsets = [0, 40], sizes = [8, 8], strides = [1, 1]} : vector<8x96xf32> to vector<8x8xf32>
    %36 = vector.extract_strided_slice %13 {offsets = [0, 72], sizes = [8, 8], strides = [1, 1]} : vector<8x96xf32> to vector<8x8xf32>
    %c0_16 = arith.constant 0 : index
    %c1 = arith.constant 1 : index
    %c0_17 = arith.constant 0 : index
    %c0_18 = arith.constant 0 : index
    %37 = vector.load %arg2[%c0_16, %c1, %c0_17, %c0_18] : memref<1x4x8x8xf32, #tpu.memory_space<vmem>>, vector<1x1x8x8xf32>
    %38 = vector.shape_cast %37 : vector<1x1x8x8xf32> to vector<8x8xf32>
    "tpu.trace_start"() <{level = 10 : i32, message = "qd,kd->qk"}> : () -> ()
    %cst_19 = arith.constant dense<0.000000e+00> : vector<8x8xf32>
    %39 = tpu.matmul %34, %35, %cst_19 {dimension_numbers = #tpu.dot_dimension_numbers<[1], [1], [0], [0], [0, 0, 1, 0], [], []>} : vector<8x8xf32>, vector<8x8xf32>, vector<8x8xf32> -> vector<8x8xf32>
    "tpu.trace_stop"() : () -> ()
    %cst_20 = arith.constant 0.353553385 : f32
    %40 = vector.broadcast %cst_20 : f32 to vector<8x8xf32>
    %41 = arith.mulf %40, %39 : vector<8x8xf32>
    %42 = arith.addf %38, %41 : vector<8x8xf32>
    %cst_21 = arith.constant dense<0xFF800000> : vector<8xf32>
    %43 = vector.multi_reduction <maximumf>, %42, %cst_21 [1] : vector<8x8xf32> to vector<8xf32>
    %44 = vector.shape_cast %43 : vector<8xf32> to vector<8x1xf32>
    %45 = vector.broadcast %44 : vector<8x1xf32> to vector<8x8xf32>
    %46 = arith.subf %42, %45 : vector<8x8xf32>
    %47 = math.exp %46 : vector<8x8xf32>
    %cst_22 = arith.constant dense<0.000000e+00> : vector<8xf32>
    %48 = vector.multi_reduction <add>, %47, %cst_22 [1] : vector<8x8xf32> to vector<8xf32>
    %49 = vector.shape_cast %48 : vector<8xf32> to vector<8x1xf32>
    %50 = tpu.reciprocal %49 {approx = true} : vector<8x1xf32> -> vector<8x1xf32>
    %51 = vector.broadcast %50 : vector<8x1xf32> to vector<8x8xf32>
    %52 = arith.mulf %47, %51 : vector<8x8xf32>
    %cst_23 = arith.constant dense<0.000000e+00> : vector<8x8xf32>
    %53 = tpu.matmul %52, %36, %cst_23 {dimension_numbers = #tpu.dot_dimension_numbers<[1], [0], [0], [1], [0, 0, 1, 1], [], []>} : vector<8x8xf32>, vector<8x8xf32>, vector<8x8xf32> -> vector<8x8xf32>
    %54 = vector.extract_strided_slice %13 {offsets = [0, 16], sizes = [8, 8], strides = [1, 1]} : vector<8x96xf32> to vector<8x8xf32>
    %55 = vector.extract_strided_slice %13 {offsets = [0, 48], sizes = [8, 8], strides = [1, 1]} : vector<8x96xf32> to vector<8x8xf32>
    %56 = vector.extract_strided_slice %13 {offsets = [0, 80], sizes = [8, 8], strides = [1, 1]} : vector<8x96xf32> to vector<8x8xf32>
    %c0_24 = arith.constant 0 : index
    %c2 = arith.constant 2 : index
    %c0_25 = arith.constant 0 : index
    %c0_26 = arith.constant 0 : index
    %57 = vector.load %arg2[%c0_24, %c2, %c0_25, %c0_26] : memref<1x4x8x8xf32, #tpu.memory_space<vmem>>, vector<1x1x8x8xf32>
    %58 = vector.shape_cast %57 : vector<1x1x8x8xf32> to vector<8x8xf32>
    "tpu.trace_start"() <{level = 10 : i32, message = "qd,kd->qk"}> : () -> ()
    %cst_27 = arith.constant dense<0.000000e+00> : vector<8x8xf32>
    %59 = tpu.matmul %54, %55, %cst_27 {dimension_numbers = #tpu.dot_dimension_numbers<[1], [1], [0], [0], [0, 0, 1, 0], [], []>} : vector<8x8xf32>, vector<8x8xf32>, vector<8x8xf32> -> vector<8x8xf32>
    "tpu.trace_stop"() : () -> ()
    %cst_28 = arith.constant 0.353553385 : f32
    %60 = vector.broadcast %cst_28 : f32 to vector<8x8xf32>
    %61 = arith.mulf %60, %59 : vector<8x8xf32>
    %62 = arith.addf %58, %61 : vector<8x8xf32>
    %cst_29 = arith.constant dense<0xFF800000> : vector<8xf32>
    %63 = vector.multi_reduction <maximumf>, %62, %cst_29 [1] : vector<8x8xf32> to vector<8xf32>
    %64 = vector.shape_cast %63 : vector<8xf32> to vector<8x1xf32>
    %65 = vector.broadcast %64 : vector<8x1xf32> to vector<8x8xf32>
    %66 = arith.subf %62, %65 : vector<8x8xf32>
    %67 = math.exp %66 : vector<8x8xf32>
    %cst_30 = arith.constant dense<0.000000e+00> : vector<8xf32>
    %68 = vector.multi_reduction <add>, %67, %cst_30 [1] : vector<8x8xf32> to vector<8xf32>
    %69 = vector.shape_cast %68 : vector<8xf32> to vector<8x1xf32>
    %70 = tpu.reciprocal %69 {approx = true} : vector<8x1xf32> -> vector<8x1xf32>
    %71 = vector.broadcast %70 : vector<8x1xf32> to vector<8x8xf32>
    %72 = arith.mulf %67, %71 : vector<8x8xf32>
    %cst_31 = arith.constant dense<0.000000e+00> : vector<8x8xf32>
    %73 = tpu.matmul %72, %56, %cst_31 {dimension_numbers = #tpu.dot_dimension_numbers<[1], [0], [0], [1], [0, 0, 1, 1], [], []>} : vector<8x8xf32>, vector<8x8xf32>, vector<8x8xf32> -> vector<8x8xf32>
    %74 = vector.extract_strided_slice %13 {offsets = [0, 24], sizes = [8, 8], strides = [1, 1]} : vector<8x96xf32> to vector<8x8xf32>
    %75 = vector.extract_strided_slice %13 {offsets = [0, 56], sizes = [8, 8], strides = [1, 1]} : vector<8x96xf32> to vector<8x8xf32>
    %76 = vector.extract_strided_slice %13 {offsets = [0, 88], sizes = [8, 8], strides = [1, 1]} : vector<8x96xf32> to vector<8x8xf32>
    %c0_32 = arith.constant 0 : index
    %c3 = arith.constant 3 : index
    %c0_33 = arith.constant 0 : index
    %c0_34 = arith.constant 0 : index
    %77 = vector.load %arg2[%c0_32, %c3, %c0_33, %c0_34] : memref<1x4x8x8xf32, #tpu.memory_space<vmem>>, vector<1x1x8x8xf32>
    %78 = vector.shape_cast %77 : vector<1x1x8x8xf32> to vector<8x8xf32>
    "tpu.trace_start"() <{level = 10 : i32, message = "qd,kd->qk"}> : () -> ()
    %cst_35 = arith.constant dense<0.000000e+00> : vector<8x8xf32>
    %79 = tpu.matmul %74, %75, %cst_35 {dimension_numbers = #tpu.dot_dimension_numbers<[1], [1], [0], [0], [0, 0, 1, 0], [], []>} : vector<8x8xf32>, vector<8x8xf32>, vector<8x8xf32> -> vector<8x8xf32>
    "tpu.trace_stop"() : () -> ()
    %cst_36 = arith.constant 0.353553385 : f32
    %80 = vector.broadcast %cst_36 : f32 to vector<8x8xf32>
    %81 = arith.mulf %80, %79 : vector<8x8xf32>
    %82 = arith.addf %78, %81 : vector<8x8xf32>
    %cst_37 = arith.constant dense<0xFF800000> : vector<8xf32>
    %83 = vector.multi_reduction <maximumf>, %82, %cst_37 [1] : vector<8x8xf32> to vector<8xf32>
    %84 = vector.shape_cast %83 : vector<8xf32> to vector<8x1xf32>
    %85 = vector.broadcast %84 : vector<8x1xf32> to vector<8x8xf32>
    %86 = arith.subf %82, %85 : vector<8x8xf32>
    %87 = math.exp %86 : vector<8x8xf32>
    %cst_38 = arith.constant dense<0.000000e+00> : vector<8xf32>
    %88 = vector.multi_reduction <add>, %87, %cst_38 [1] : vector<8x8xf32> to vector<8xf32>
    %89 = vector.shape_cast %88 : vector<8xf32> to vector<8x1xf32>
    %90 = tpu.reciprocal %89 {approx = true} : vector<8x1xf32> -> vector<8x1xf32>
    %91 = vector.broadcast %90 : vector<8x1xf32> to vector<8x8xf32>
    %92 = arith.mulf %87, %91 : vector<8x8xf32>
    %cst_39 = arith.constant dense<0.000000e+00> : vector<8x8xf32>
    %93 = tpu.matmul %92, %76, %cst_39 {dimension_numbers = #tpu.dot_dimension_numbers<[1], [0], [0], [1], [0, 0, 1, 1], [], []>} : vector<8x8xf32>, vector<8x8xf32>, vector<8x8xf32> -> vector<8x8xf32>
    %94 = tpu.concatenate %33, %53, %73, %93 in 1 : vector<8x8xf32>, vector<8x8xf32>, vector<8x8xf32>, vector<8x8xf32> -> vector<8x32xf32>
    %c0_40 = arith.constant 0 : index
    %c0_41 = arith.constant 0 : index
    %95 = vector.load %arg4[%c0_40, %c0_41] : memref<32x32xf32, #tpu.memory_space<vmem>>, vector<32x32xf32>
    %cst_42 = arith.constant dense<0.000000e+00> : vector<8x32xf32>
    %96 = tpu.matmul %94, %95, %cst_42 {dimension_numbers = #tpu.dot_dimension_numbers<[1], [0], [0], [1], [0, 0, 1, 1], [], []>} : vector<8x32xf32>, vector<32x32xf32>, vector<8x32xf32> -> vector<8x32xf32>
    %97 = arith.addf %1, %96 : vector<8x32xf32>
    %98 = arith.mulf %97, %97 : vector<8x32xf32>
    %cst_43 = arith.constant dense<0.000000e+00> : vector<8xf32>
    %99 = vector.multi_reduction <add>, %98, %cst_43 [1] : vector<8x32xf32> to vector<8xf32>
    %100 = vector.shape_cast %99 : vector<8xf32> to vector<8x1xf32>
    %cst_44 = arith.constant 3.200000e+01 : f32
    %101 = vector.broadcast %cst_44 : f32 to vector<8x1xf32>
    %102 = arith.divf %100, %101 : vector<8x1xf32>
    %cst_45 = arith.constant 9.99999997E-7 : f32
    %103 = vector.broadcast %cst_45 : f32 to vector<8x1xf32>
    %104 = arith.addf %102, %103 : vector<8x1xf32>
    %105 = math.rsqrt %104 : vector<8x1xf32>
    %106 = vector.broadcast %105 : vector<8x1xf32> to vector<8x32xf32>
    %107 = arith.mulf %97, %106 : vector<8x32xf32>
    %c0_46 = arith.constant 0 : index
    %c0_47 = arith.constant 0 : index
    %108 = vector.load %arg5[%c0_46, %c0_47] : memref<32x128xf32, #tpu.memory_space<vmem>>, vector<32x128xf32>
    %cst_48 = arith.constant dense<0.000000e+00> : vector<8x128xf32>
    %109 = tpu.matmul %107, %108, %cst_48 {dimension_numbers = #tpu.dot_dimension_numbers<[1], [0], [0], [1], [0, 0, 1, 1], [], []>} : vector<8x32xf32>, vector<32x128xf32>, vector<8x128xf32> -> vector<8x128xf32>
    %110 = vector.extract_strided_slice %109 {offsets = [0, 0], sizes = [8, 64], strides = [1, 1]} : vector<8x128xf32> to vector<8x64xf32>
    %111 = vector.extract_strided_slice %109 {offsets = [0, 64], sizes = [8, 64], strides = [1, 1]} : vector<8x128xf32> to vector<8x64xf32>
    %112 = arith.negf %110 : vector<8x64xf32>
    %113 = math.exp %112 : vector<8x64xf32>
    %cst_49 = arith.constant 1.000000e+00 : f32
    %114 = vector.broadcast %cst_49 : f32 to vector<8x64xf32>
    %115 = arith.addf %114, %113 : vector<8x64xf32>
    %116 = arith.divf %114, %115 : vector<8x64xf32>
    %117 = arith.mulf %110, %116 : vector<8x64xf32>
    %118 = arith.mulf %117, %111 : vector<8x64xf32>
    %c0_50 = arith.constant 0 : index
    %c0_51 = arith.constant 0 : index
    %119 = vector.load %arg6[%c0_50, %c0_51] : memref<64x32xf32, #tpu.memory_space<vmem>>, vector<64x32xf32>
    %cst_52 = arith.constant dense<0.000000e+00> : vector<8x32xf32>
    %120 = tpu.matmul %118, %119, %cst_52 {dimension_numbers = #tpu.dot_dimension_numbers<[1], [0], [0], [1], [0, 0, 1, 1], [], []>} : vector<8x64xf32>, vector<64x32xf32>, vector<8x32xf32> -> vector<8x32xf32>
    %121 = arith.addf %97, %120 : vector<8x32xf32>
    %c0_53 = arith.constant 0 : index
    %c0_54 = arith.constant 0 : index
    %c0_55 = arith.constant 0 : index
    %122 = vector.load %arg7[%c0_53, %c0_54, %c0_55] : memref<1x8x32xf32, #tpu.memory_space<vmem>>, vector<1x8x32xf32>
    %123 = vector.shape_cast %122 : vector<1x8x32xf32> to vector<8x32xf32>
    %124 = vector.shape_cast %121 : vector<8x32xf32> to vector<1x8x32xf32>
    tpu.vector_store %arg7[%c0_53, %c0_54, %c0_55], %124 {strides = array<i32>} : memref<1x8x32xf32, #tpu.memory_space<vmem>>, vector<1x8x32xf32>,
    return
  }
  func.func @transform_0(%arg0: i32) -> (i32, i32, i32) {
    %c0_i32 = arith.constant 0 : i32
    %c0_i32_0 = arith.constant 0 : i32
    %c0_i32_1 = arith.constant 0 : i32
    return %arg0, %c0_i32, %c0_i32_0 : i32, i32, i32
  }
  func.func @transform_1(%arg0: i32) -> (i32, i32, i32, i32) {
    %c0_i32 = arith.constant 0 : i32
    %c0_i32_0 = arith.constant 0 : i32
    %c0_i32_1 = arith.constant 0 : i32
    %c0_i32_2 = arith.constant 0 : i32
    return %arg0, %c0_i32, %c0_i32_0, %c0_i32_1 : i32, i32, i32, i32
  }
  func.func @transform_2(%arg0: i32) -> (i32, i32) {
    %c0_i32 = arith.constant 0 : i32
    %c0_i32_0 = arith.constant 0 : i32
    %c0_i32_1 = arith.constant 0 : i32
    return %c0_i32, %c0_i32_0 : i32, i32
  }
  func.func @transform_3(%arg0: i32) -> (i32, i32) {
    %c0_i32 = arith.constant 0 : i32
    %c0_i32_0 = arith.constant 0 : i32
    %c0_i32_1 = arith.constant 0 : i32
    return %c0_i32, %c0_i32_0 : i32, i32
  }
  func.func @transform_4(%arg0: i32) -> (i32, i32) {
    %c0_i32 = arith.constant 0 : i32
    %c0_i32_0 = arith.constant 0 : i32
    %c0_i32_1 = arith.constant 0 : i32
    return %c0_i32, %c0_i32_0 : i32, i32
  }
  func.func @transform_5(%arg0: i32) -> (i32, i32) {
    %c0_i32 = arith.constant 0 : i32
    %c0_i32_0 = arith.constant 0 : i32
    %c0_i32_1 = arith.constant 0 : i32
    return %c0_i32, %c0_i32_0 : i32, i32
  }
  func.func @transform_6(%arg0: i32) -> (i32, i32, i32) {
    %c0_i32 = arith.constant 0 : i32
    %c0_i32_0 = arith.constant 0 : i32
    %c0_i32_1 = arith.constant 0 : i32
    return %arg0, %c0_i32, %c0_i32_0 : i32, i32, i32
  }
}

</mosaic_0001>

<bundles_post_ra>
// kernel: tpu_custom_call.1
= control target key start
LH: loop header
LB: loop body
LE: loop exit
PB: predicated region body
PF: predicated region fallthrough
CT: control target
= control target key end

     0   :  { %s2280_s0 = inlined_call_operand.hbm [shape: f32[2,8,32], index: 0, kind: input, shape index: {}]   ;;  %s2281_s1 = inlined_call_operand.vmem [shape: f32[2,4,8,8], index: 1, kind: input, shape index: {}]   ;;  %s2282_s2 = inlined_call_operand.vmem [shape: f32[32,96], index: 2, kind: input, shape index: {}]   ;;  %s2283_s3 = inlined_call_operand.hbm [shape: f32[32,32], index: 3, kind: input, shape index: {}]   ;;  %s2284_s4 = inlined_call_operand.hbm [shape: f32[32,128], index: 4, kind: input, shape index: {}]   ;;  %s2285_s5 = inlined_call_operand.vmem [shape: f32[64,32], index: 5, kind: input, shape index: {}]   ;;  %s2286_s6 = inlined_call_operand.hbm [shape: f32[2,8,32], index: 6, kind: output, shape index: {}]  }
   0x1   :  { %2291 = sst [smem:[#allocation12_spill]] %s2283_s3 }
   0x2   :  { %11 = vsyncpa [#allocation3], 0 }
   0x3   :  { %13 = vsyncpa [#allocation3 + $0x1], 0 }
   0x4   :  { %14 = vsyncpa [#allocation6], 0 }
   0x5   :  { %15 = vsyncpa [#allocation4], 0 }
   0x6   :  { %17 = vsyncpa [#allocation4 + $0x1], 0  ;;  %s1957_s21 = smov 0   ;;  %s1959_s22 = smov 0  }
   0x7   :  { %s1961_s23 = smov 0   ;;  %s1963_s24 = smov 0  }
   0x8 LB: > { %s1978_s25 = sadd.s32 4294967295, %s1898_s24   ;;  %s1470_s26 = sadd.s32 4294967294, %s1898_s24   ;;  %s1898_s24 = sphi %s1963_s24, %s2310_s24   ;;  %s1894_s23 = sphi %s1961_s23, %s2309_s23   ;;  %s1890_s22 = sphi %s1959_s22, %s2308_s22   ;;  %s1886_s21 = sphi %s1957_s21, %s2307_s21  }
   0x9   : > { %p43_p0 = scmp.ne.s32.totalorder %s1890_s22, %s1886_s21  ;;  %p2287_p1 = scmp.eq.s32.totalorder %s1978_s25, 0 }
   0xa   : > { %p183_p3 = scmp.eq.s32.totalorder %s1470_s26, 1  ;;  %p1471_p5 = scmp.ge.s32.totalorder %s1898_s24, 1 }
   0xb   : > { %p1987_p4 = por %p2287_p1, %p43_p0  ;;  %p190_p7 = scmp.lt.s32.totalorder %s1898_s24, 3 }
   0xc   : > { %p1992_p6 = por %p183_p3, %p43_p0  ;;  %s1900_s30 = smov [#allocation5]  }
   0xd   : > { %s2292_s27 = scalar_select %p1987_p4, 1, 0 }
   0xe   : > { %s2293_s28 = scalar_select %p1992_p6, 1, 0 }
   0xf   : > { %p1997_p8 = pnand %p1471_p5, %p190_p7  ;;  %s205_s7 = sshll.u32 %s1900_s30, 4  ;;  %s206_s7 = int_to_ptr.vmem [resolvable:$true] %s205_s7 }
  0x10   : > { %s1901_s9 = smov [#allocation7]   ;;  %s1761_s11 = scalar_lea.vmem %s206_s7, 512 }
  0x11   : > { %s2294_s29 = scalar_select %p1997_p8, 1, 0 }
  0x12   : > { %p1653_p9 = pneg %p1997_p8  ;;  %s218_s10 = sshll.u32 %s1901_s9, 4  ;;  %s219_s10 = int_to_ptr.vmem [resolvable:$true] %s218_s10 }
  0x13   : > { %p1762_p13 = scmp.ne.s32.totalorder %s206_s7, %s1761_s11  ;;  %p1769_p5 = scmp.lt.s32.totalorder %s206_s7, %s206_s7 }
  0x14   : > { %p2006_p11 = pnand %p1653_p9, %p2287_p1  ;;  %p1770_p7 = scmp.lt.s32.totalorder %s1761_s11, %s1761_s11 }
  0x16   : > { %p1752_p12 = pneg %p2006_p11  ;;  %p1771_p10 = por %p1770_p7, %p1769_p5 }
  0x18   : > { %p1764_p0 = pnand %p1762_p13, %p1752_p12 }
  0x1a   : > { %p1765_p3 = pneg %p1764_p0 }
  0x1c   : > { %p1772_p9 = pnand %p1771_p10, %p1765_p3 }
  0x1e   : > { %1775 = shalt.err (!%p1772_p9)
}
  0x1f   : > { %s1902_s12 = smov 128   ;;  %s1903_s13 = smov 8  }
  0x20   : > { %s2296_s3 = sld [smem:[#allocation12_spill]]  ;;  %s1787_s16 = scalar_lea.vmem %s219_s10, 512 }
  0x21   : > { %p1788_p1 = scmp.ne.s32.totalorder %s219_s10, %s1787_s16  ;;  %p1795_p2 = scmp.lt.s32.totalorder %s219_s10, %s219_s10 }
  0x22   : > { %p1796_p6 = scmp.lt.s32.totalorder %s1787_s16, %s1787_s16 }
  0x23   : > { %p1790_p13 = pnand %p1788_p1, %p1752_p12 }
  0x24   : > { %p1797_p5 = por %p1796_p6, %p1795_p2 }
  0x25   : > { %p1791_p0 = pneg %p1790_p13 }
  0x26   : > { %1656 = dma.hbm_to_vmem [thread:$0]  (!%p2006_p11), %s2296_s3, 512, %s206_s7, [#allocation6], %s1902_s12, %s1902_s12, %s1903_s13  }
  0x27   : > { %p1798_p10 = pnand %p1797_p5, %p1791_p0 }
  0x29   : > { %1801 = shalt.err (!%p1798_p10)
}
  0x2a   : > { %1659 = dma.hbm_to_vmem [thread:$0]  (!%p2006_p11), %s2284_s4, 512, %s219_s10, [#allocation6], %s1902_s12, %s1902_s12, %s1903_s13  }
  0x2b   : > { %s2029_s19 = sadd.s32 1, %s1898_s24   ;;  %s30_s20 = sadd.s32 1, %s1894_s23 }
  0x2c   : > { %s27_s26 = ssub.s32 %s1898_s24, %s2029_s19  ;;  %p37_p1 = scmp.ne.s32.totalorder %s1894_s23, %s1890_s22 }
  0x2d   : > { %p28_p2 = scmp.eq.s32.totalorder %s27_s26, 0  ;;  %p38_p6 = scmp.eq.s32.totalorder %s1898_s24, 0 }
  0x2e   : > { %p2297_p12 = scmp.eq.s32.totalorder %s1978_s25, 1  ;;  %p1670_p7 = scmp.lt.s32.totalorder %s1898_s24, 2 }
  0x2f   : > { %s2045_s7 = scalar_select %p28_p2, %s1894_s23, %s30_s20  }
  0x30   : > { %p2039_p3 = por %p2297_p12, %p37_p1  ;;  %p39_p9 = por %p38_p6, %p37_p1 }
  0x31   : > { %s235_s8 = sand.u32 1, %s1894_s23   ;;  %s1476_s10 = sshll.u32 %s1898_s24, 7 }
  0x32   : > { %s2298_s30 = scalar_select %p2039_p3, 1, 0 }
  0x33   : > { %s1475_s9 = sshll.u32 %s235_s8, 3  ;;  %s2052_s13 = scalar_lea.hbm %s2280_s0, %s1476_s10 }
  0x34   : > { %s239_s14 = scalar_lea.vmem [#allocation2], %s1475_s9  ;;  %p2054_p11 = pnand %p1670_p7, %p39_p9 }
  0x35   : > { %s246_s15 = sshll.u32 %s239_s14, 4  ;;  %s236_s17 = scalar_lea.sflag [#allocation3], %s235_s8  ;;  %s247_s15 = int_to_ptr.vmem [resolvable:$true] %s246_s15 }
  0x36   : > { %s1802_s18 = scalar_lea.hbm %s2052_s13, 128  ;;  %p1804_p0 = pneg %p2054_p11 }
  0x37   : > { %p1803_p13 = scmp.ne.s32.totalorder %s2052_s13, %s1802_s18  ;;  %s1807_s10 = scalar_lea.hbm %s2280_s0, 256 }
  0x38   : > { %p1808_p1 = scmp.lt.s32.totalorder %s2052_s13, %s2280_s0  ;;  %p1809_p2 = scmp.lt.s32.totalorder %s1807_s10, %s1802_s18 }
  0x39   : > { %p1805_p5 = pnand %p1804_p0, %p1803_p13 }
  0x3a   : > { %p1810_p6 = por %p1809_p2, %p1808_p1 }
  0x3b   : > { %p1806_p10 = pneg %p1805_p5 }
  0x3d   : > { %p1811_p12 = pnand %p1810_p6, %p1806_p10 }
  0x3f   : > { %1814 = shalt.err (!%p1811_p12)
}
  0x40   : > { %s1815_s12 = scalar_lea.vmem %s247_s15, 128  ;;  %s1904_s8 = smov [#allocation2]  }
  0x41   : > { %p1816_p7 = scmp.ne.s32.totalorder %s247_s15, %s1815_s12  ;;  %s1820_s14 = sshll.u32 %s1904_s8, 4  ;;  %s1821_s14 = int_to_ptr.vmem [resolvable:$false] %s1820_s14 }
  0x42   : > { %s1822_s3 = scalar_lea.vmem %s1821_s14, 256  ;;  %p1823_p13 = scmp.lt.s32.totalorder %s247_s15, %s1821_s14 }
  0x43   : > { %p1818_p9 = pnand %p1816_p7, %p1804_p0  ;;  %p1824_p5 = scmp.lt.s32.totalorder %s1822_s3, %s1815_s12 }
  0x45   : > { %p1819_p3 = pneg %p1818_p9  ;;  %p1825_p4 = por %p1824_p5, %p1823_p13 }
  0x47   : > { %p1826_p8 = pnand %p1825_p4, %p1819_p3 }
  0x49   : > { %1829 = shalt.err (!%p1826_p8)
}
  0x4a   : > { %1663 = dma.hbm_to_vmem [thread:$0]  (!%p2054_p11), %s2052_s13, 128, %s247_s15, %s236_s17  }
  0x4b   : > { %p2300_p10 = scmp.ne.s32.totalorder %s2294_s29, 0 }
  0x4c   : > { %s2075_s18 = sand.u32 (!%p2300_p10), 1, %s1890_s22   ;;  %p2301_p4 = scmp.ne.s32.totalorder (!%p2300_p10), %s2292_s27, 0 }
  0x4d   : > { %263 = sbr.rel (%p2300_p10) target bundleno = 2308 (0x904), region = 44  ;;  %s1478_s20 = sshll.u32 (!%p2300_p10), %s2075_s18, 3 }
  0x4e   : > { %s266_s26 = scalar_lea.sflag (!%p2300_p10), [#allocation3], %s2075_s18  ;;  %s269_s3 = scalar_lea.vmem (!%p2300_p10), [#allocation2], %s1478_s20 }
  0x52   : > { %1873 = dma.done.wait (%p2301_p4), %s266_s26, 128  }
  0x53   : > { %1875 = vsyncadd (%p2301_p4), %s266_s26, 4294967168  ;;  %p2302_p8 = scmp.eq.s32.totalorder %s1978_s25, 0 }
  0x55   : > { %1877 = dma.done.wait (%p2302_p8), [#allocation6], 1024   ;;  %p2303_p3 = pmov %p2302_p8 }
  0x56   : > { %v2089_v0 = vld [vmem:[%s269_s3] sm:$0xff]  ;;  %vm318_vm0 = vcmask 261120   ;;  %v330_v3 = vld [vmem:[%s2282_s2 + $0x18] sm:$0xff]  ;;  %v1905_v4 = vmov 0.0   ;;  %v329_v5 = vld [vmem:[%s2282_s2 + $0x10] sm:$0xff]  ;;  %vm1906_vm1 = vmmov 0  }
  0x57   : > { %1879 = vsyncadd (%p2303_p3), [#allocation6], 4294966272  ;;  %v317_v1 = vmul.f32 %v2089_v0, %v2089_v0  ;;  %1549 = vmatprep.subr.mxu1 %v1905_v4  ;;  %1557 = vmatprep.mubr.msk.f32.mxu1 %vm1906_vm1, %v1905_v4  ;;  %v328_v6 = vld [vmem:[%s2282_s2 + $0x8] sm:$0xff]  ;;  %v327_v7 = vld [vmem:[%s2282_s2] sm:$0xff]  ;;  %s1907_s9 = smov 88   ;;  %s1908_s12 = smov 96  }
  0x58   : > { %1550 = vmatpush3.msra.mxu1 %v330_v3  ;;  %1570 = vmatprep.subr.mxu0 %v1905_v4  ;;  %s1909_s8 = smov 120   ;;  %s1910_s14 = smov 80   ;;  %vm408_vm2 = vcmask 64512   ;;  %vm1092_vm3 = vcmask 130048   ;;  %vm1094_vm4 = vcmask 195584   ;;  %vm1279_vm5 = vcmask 523264  }
  0x59   : > { %v319_v2 = vsel %vm318_vm0, %v317_v1, 0.0  ;;  %1551 = vmatprep.subr.mxu1 %v1905_v4  ;;  %1572 = vmatprep.mubr.msk.f32.mxu0 %vm1906_vm1, %v1905_v4  ;;  %s1911_s26 = smov 112   ;;  %s1912_s3 = smov 72  }
  0x5a   : > { %320 = vadd.xlane.f32.xlu0 %v319_v2  ;;  %1552 = vmatpush3.msra.mxu1 %v329_v5  ;;  %s1913_s29 = smov 104   ;;  %p311_p11 = scmp.lt.s32.totalorder %s1978_s25, 1 }
  0x5b   : > { %1553 = vmatprep.subr.mxu1 %v1905_v4  ;;  %s1914_s10 = smov 56   ;;  %s1915_s11 = smov 64  }
  0x5c   : > { %1554 = vmatpush3.msra.mxu1 %v328_v6  ;;  %s312_s13 = scalar_select %p311_p11, %s1978_s25, 1 }
  0x5d   : > { %1555 = vmatprep.subr.mxu1 %v1905_v4  ;;  %s310_s15 = scalar_lea.vmem [#allocation8], %s1478_s20  ;;  %p2304_p1 = scmp.ne.s32.totalorder %s2298_s30, 0 }
  0x5e   : > { %1556 = vmatpush3.msra.mxu1 %v327_v7  ;;  %s1508_s27 = sshll.u32 %s312_s13, 5  ;;  %s1369_s16 = sshll.u32 %s310_s15, 4  ;;  %s1370_s16 = int_to_ptr.vmem [resolvable:$true] %s1369_s16 }
  0x5f   : > { %1560 = vmatprep.subr.mxu1 %v1905_v4  ;;  %s315_s17 = scalar_lea.vmem %s2281_s1, %s1508_s27  ;;  %s1505_s27 = sshll.u32 %s1978_s25, 7 }
  0x60   : > { %v404_v23 = vld [vmem:[%s315_s17] sm:$0xff]  ;;  %v1488_v26 = vld [vmem:[%s315_s17 + $0x8] sm:$0xff]  ;;  %v1492_v35 = vld [vmem:[%s315_s17 + $0x10] sm:$0xff]  ;;  %s1921_s25 = smov [#allocation8]  }
  0x61   : > { %v1496_v41 = vld [vmem:[%s315_s17 + $0x18] sm:$0xff]  ;;  %s1834_s20 = sshll.u32 %s1921_s25, 4  ;;  %s1835_s20 = int_to_ptr.vmem [resolvable:$false] %s1834_s20 }
  0x62   : > { %p1837_p12 = scmp.lt.s32.totalorder %s1370_s16, %s1835_s20 }
  0xe3   : > { %v321_v8 = vpop.xlane.xlu0 %320 }
  0xe4   : > { %v323_v9 = vmul.f32 0.03125, %v321_v8 }
  0xe6   : > { %v324_v10 = vadd.f32 1e-06, %v323_v9 }
  0xe8   : > { %1726 = vrsqrt.f32 %v324_v10 }
  0xf5   : > { %v1727_v11 = vpop.eup %1726 }
  0xf6   : > { %v326_v12 = vmul.f32 %v1727_v11, %v2089_v0 }
  0xf8   : > { %1558 = vmatmul.mubr.msk.f32.vlgmr.msra.gmra.mxu1 %vm318_vm0, %v326_v12 }
  0xf9   : > { %1562 = vmatprep.mubr.msk.f32.mxu1 %vm1906_vm1, %v1905_v4 }
 0x1b8   : > { %v2120_v13 = vpop.f32.mrf.mxu1 }
 0x1b9   : > { %576 = vrot.lane.b32.xlu1 %v2120_v13, %s1907_s9  ;;  %406 = vrot.lane.b32.xlu0 %v2120_v13, %s1908_s12  ;;  %s1916_s9 = smov 48   ;;  %s1917_s12 = smov 40  }
 0x1ba   : > { %v1559_v14 = vpop.f32.mrf.mxu1 }
 0x1bd   : > { %574 = vrot.lane.b32.xlu1 %v2120_v13, %s1909_s8  ;;  %s1918_s8 = smov 8  }
 0x1c1   : > { %745 = vrot.lane.b32.xlu1 %v2120_v13, %s1910_s14  ;;  %s1919_s14 = smov 16  }
 0x1c5   : > { %743 = vrot.lane.b32.xlu1 %v2120_v13, %s1911_s26  ;;  %s1920_s26 = smov 24  }
 0x1c9   : > { %914 = vrot.lane.b32.xlu1 %v2120_v13, %s1912_s3 }
 0x1cd   : > { %912 = vrot.lane.b32.xlu1 %v2120_v13, %s1913_s29 }
 0x22b   : > { %v577_v15 = vpop.permute.xlu1 %576  ;;  %v407_v16 = vpop.permute.xlu0 %406 }
 0x22c   : > { %1561 = vmatpush3.xpose.msk.msra.mxu1 %vm408_vm2, %v407_v16  ;;  %1571 = vmatpush3.xpose.msk.msra.mxu0 %vm408_vm2, %v577_v15 }
 0x22d   : > { %1580 = vmatprep.subr.mxu0 %v1905_v4  ;;  %1565 = vmatprep.subr.mxu1 %v1905_v4 }
 0x22f   : > { %v575_v17 = vpop.permute.xlu1 %574  ;;  %1563 = vmatmul.mubr.msk.f32.vlgmr.msra.gmra.mxu1 %vm408_vm2, %v2120_v13 }
 0x230   : > { %1573 = vmatmul.mubr.msk.f32.vlgmr.msra.gmra.mxu0 %vm408_vm2, %v575_v17  ;;  %1567 = vmatprep.mubr.msk.f32.mxu1 %vm1906_vm1, %v1905_v4 }
 0x231   : > { %1582 = vmatprep.mubr.msk.f32.mxu0 %vm1906_vm1, %v1905_v4 }
 0x233   : > { %v746_v18 = vpop.permute.xlu1 %745 }
 0x234   : > { %1581 = vmatpush3.xpose.msk.msra.mxu0 %vm408_vm2, %v746_v18 }
 0x235   : > { %1590 = vmatprep.subr.mxu0 %v1905_v4 }
 0x237   : > { %v744_v19 = vpop.permute.xlu1 %743 }
 0x238   : > { %1583 = vmatmul.mubr.msk.f32.vlgmr.msra.gmra.mxu0 %vm408_vm2, %v744_v19 }
 0x239   : > { %1592 = vmatprep.mubr.msk.f32.mxu0 %vm1906_vm1, %v1905_v4 }
 0x23b   : > { %v915_v20 = vpop.permute.xlu1 %914 }
 0x23c   : > { %1591 = vmatpush3.xpose.msk.msra.mxu0 %vm408_vm2, %v915_v20  ;;  %v1099_v20 = vld [vmem:[#allocation5 + $0x18] sm:$0xff] }
 0x23d   : > { %1600 = vmatprep.subr.mxu0 %v1905_v4 }
 0x23f   : > { %v913_v21 = vpop.permute.xlu1 %912 }
 0x240   : > { %1593 = vmatmul.mubr.msk.f32.vlgmr.msra.gmra.mxu0 %vm408_vm2, %v913_v21 }
 0x241   : > { %1608 = vmatprep.mubr.msk.f32.mxu0 %vm1906_vm1, %v1905_v4  ;;  %1601 = vmatpush3.msra.mxu0 %v1099_v20 }
 0x242   : > { %1602 = vmatprep.subr.mxu0 %v1905_v4 }
 0x2ef   : > { %v479_v22 = vpop.f32.mrf.mxu1 }
 0x2f0   : > { %v483_v24 = vmul.f32 0.35355338, %v479_v22  ;;  %v648_v25 = vpop.f32.mrf.mxu0 }
 0x2f1   : > { %v652_v27 = vmul.f32 0.35355338, %v648_v25  ;;  %v1564_v28 = vpop.f32.mrf.mxu1  ;;  %v1098_v25 = vld [vmem:[#allocation5 + $0x10] sm:$0xff] }
 0x2f2   : > { %v1574_v29 = vpop.f32.mrf.mxu0  ;;  %v484_v30 = vadd.f32 %v483_v24, %v404_v23  ;;  %1603 = vmatpush3.msra.mxu0 %v1098_v25 }
 0x2f3   : > { %v653_v31 = vadd.f32 %v1488_v26, %v652_v27  ;;  %v1097_v26 = vld [vmem:[#allocation5 + $0x8] sm:$0xff]  ;;  %1604 = vmatprep.subr.mxu0 %v1905_v4  ;;  %v1096_v27 = vld [vmem:[#allocation5] sm:$0xff] }
 0x2f4   : > { %v485_v32 = vsel %vm408_vm2, %v484_v30, -inf  ;;  %1605 = vmatpush3.msra.mxu0 %v1097_v26 }
 0x2f5   : > { %486 = vmax.xlane.f32.xlu1 %v485_v32  ;;  %v654_v33 = vsel %vm408_vm2, %v653_v31, -inf  ;;  %1606 = vmatprep.subr.mxu0 %v1905_v4 }
 0x2f6   : > { %655 = vmax.xlane.f32.xlu0 %v654_v33  ;;  %1607 = vmatpush3.msra.mxu0 %v1096_v27 }
 0x2f7   : > { %1622 = vmatprep.subr.mxu0 %v1905_v4 }
 0x2f8   : > { %v817_v34 = vpop.f32.mrf.mxu0 }
 0x2f9   : > { %v821_v36 = vmul.f32 0.35355338, %v817_v34 }
 0x2fa   : > { %v1584_v37 = vpop.f32.mrf.mxu0 }
 0x2fb   : > { %v822_v38 = vadd.f32 %v1492_v35, %v821_v36 }
 0x2fd   : > { %v823_v39 = vsel %vm408_vm2, %v822_v38, -inf }
 0x2fe   : > { %824 = vmax.xlane.f32.xlu0 %v823_v39 }
 0x300   : > { %v986_v40 = vpop.f32.mrf.mxu0 }
 0x301   : > { %v990_v42 = vmul.f32 0.35355338, %v986_v40 }
 0x302   : > { %v1594_v43 = vpop.f32.mrf.mxu0 }
 0x303   : > { %v991_v44 = vadd.f32 %v1496_v41, %v990_v42  ;;  %v1185_v43 = vld [vmem:[#allocation7 + $0x18] sm:$0xff] }
 0x305   : > { %v992_v45 = vsel %vm408_vm2, %v991_v44, -inf }
 0x306   : > { %993 = vmax.xlane.f32.xlu1 %v992_v45  ;;  %v1183_v45 = vld [vmem:[#allocation7 + $0x8] sm:$0xff] }
 0x317   : > { %665 = vrot.lane.b32.xlu1 %v2120_v13, %s1914_s10  ;;  %s2242_s10 = scalar_lea.hbm %s2286_s6, %s1505_s27 }
 0x37e   : > { %v487_v46 = vpop.xlane.xlu1 %486 }
 0x37f   : > { %v488_v47 = vsub.f32 %v484_v30, %v487_v46  ;;  %v656_v48 = vpop.xlane.xlu0 %655  ;;  %v1182_v46 = vld [vmem:[#allocation7] sm:$0xff] }
 0x380   : > { %v657_v49 = vsub.f32 %v653_v31, %v656_v48 }
 0x381   : > { %v489_v50 = vmul.f32 1.442695, %v488_v47 }
 0x382   : > { %v658_v51 = vmul.f32 1.442695, %v657_v49 }
 0x383   : > { %1728 = vpow2.f32 %v489_v50 }
 0x384   : > { %1730 = vpow2.f32 %v658_v51  ;;  %v1278_v51 = vld [vmem:[%s2285_s5 + $0x38] sm:$0xff] }
 0x387   : > { %v825_v61 = vpop.xlane.xlu0 %824 }
 0x388   : > { %v826_v62 = vsub.f32 %v822_v38, %v825_v61 }
 0x38a   : > { %v827_v63 = vmul.f32 1.442695, %v826_v62 }
 0x38f   : > { %v994_v52 = vpop.xlane.xlu1 %993 }
 0x390   : > { %v1729_v53 = vpop.eup %1728  ;;  %v995_v54 = vsub.f32 %v991_v44, %v994_v52  ;;  %v1184_v44 = vld [vmem:[#allocation7 + $0x10] sm:$0xff]  ;;  %v1277_v52 = vld [vmem:[%s2285_s5 + $0x30] sm:$0xff] }
 0x391   : > { %v1731_v55 = vpop.eup %1730  ;;  %v491_v56 = vsel %vm408_vm2, %v1729_v53, 0.0 }
 0x392   : > { %v996_v57 = vmul.f32 1.442695, %v995_v54  ;;  %492 = vadd.xlane.f32.xlu0 %v491_v56  ;;  %v660_v58 = vsel %vm408_vm2, %v1731_v55, 0.0  ;;  %v1275_v54 = vld [vmem:[%s2285_s5 + $0x20] sm:$0xff]  ;;  %v1273_v56 = vld [vmem:[%s2285_s5 + $0x10] sm:$0xff] }
 0x393   : > { %661 = vadd.xlane.f32.xlu1 %v660_v58  ;;  %v666_v3 = vpop.permute.xlu1 %665  ;;  %v1271_v58 = vld [vmem:[%s2285_s5] sm:$0xff] }
 0x394   : > { %1732 = vpow2.f32 %v996_v57  ;;  %v1272_v57 = vld [vmem:[%s2285_s5 + $0x8] sm:$0xff] }
 0x395   : > { %1734 = vpow2.f32 %v827_v63 }
 0x3a1   : > { %v1733_v59 = vpop.eup %1732 }
 0x3a2   : > { %v998_v60 = vsel %vm408_vm2, %v1733_v59, 0.0  ;;  %v1735_v1 = vpop.eup %1734 }
 0x3a3   : > { %999 = vadd.xlane.f32.xlu1 %v998_v60  ;;  %v829_v2 = vsel %vm408_vm2, %v1735_v1, 0.0 }
 0x3a8   : > { %496 = vrot.lane.b32.xlu0 %v2120_v13, %s1915_s11 }
 0x3b4   : > { %834 = vrot.lane.b32.xlu1 %v2120_v13, %s1916_s9  ;;  %s1356_s9 = scalar_lea.sflag [#allocation4], %s2075_s18 }
 0x3c7   : > { %830 = vadd.xlane.f32.xlu0 %v829_v2 }
 0x3dd   : > { %1003 = vrot.lane.b32.xlu0 %v2120_v13, %s1917_s12  ;;  %s1830_s12 = scalar_lea.vmem %s1370_s16, 128 }
 0x3de   : > { %p1831_p0 = scmp.ne.s32.totalorder %s1370_s16, %s1830_s12 }
 0x3e0   : > { %p1832_p2 = pnand %p1831_p0, %p2304_p1 }
 0x3e2   : > { %p1833_p6 = pneg %p1832_p2 }
 0x41b   : > { %v493_v5 = vpop.xlane.xlu0 %492 }
 0x41c   : > { %1736 = vrcp.f32 %v493_v5  ;;  %v662_v6 = vpop.xlane.xlu1 %661 }
 0x41d   : > { %1738 = vrcp.f32 %v662_v6 }
 0x41f   : > { %v497_v7 = vpop.permute.xlu0 %496 }
 0x420   : > { %1566 = vmatpush3.msra.mxu1 %v497_v7 }
 0x421   : > { %1575 = vmatprep.subr.mxu1 %v1905_v4 }
 0x429   : > { %v1737_v8 = vpop.eup %1736 }
 0x42a   : > { %v495_v9 = vmul.f32 %v1737_v8, %v1729_v53  ;;  %v1739_v10 = vpop.eup %1738  ;;  %v1276_v53 = vld [vmem:[%s2285_s5 + $0x28] sm:$0xff] }
 0x42b   : > { %v664_v12 = vmul.f32 %v1739_v10, %v1731_v55  ;;  %v1274_v55 = vld [vmem:[%s2285_s5 + $0x18] sm:$0xff] }
 0x42c   : > { %1568 = vmatmul.mubr.msk.f32.vlgmr.msra.gmra.mxu1 %vm408_vm2, %v495_v9  ;;  %v1000_v11 = vpop.xlane.xlu1 %999 }
 0x42d   : > { %1576 = vmatpush3.msra.mxu1 %v666_v3  ;;  %1577 = vmatprep.mubr.msk.f32.mxu1 %vm1906_vm1, %v1905_v4 }
 0x42e   : > { %1585 = vmatprep.subr.mxu1 %v1905_v4 }
 0x430   : > { %1578 = vmatmul.mubr.msk.f32.vlgmr.msra.gmra.mxu1 %vm408_vm2, %v664_v12  ;;  %v835_v13 = vpop.permute.xlu1 %834 }
 0x431   : > { %1586 = vmatpush3.msra.mxu1 %v835_v13  ;;  %1587 = vmatprep.mubr.msk.f32.mxu1 %vm1906_vm1, %v1905_v4 }
 0x432   : > { %1595 = vmatprep.subr.mxu1 %v1905_v4 }
 0x450   : > { %v831_v14 = vpop.xlane.xlu0 %830 }
 0x451   : > { %1740 = vrcp.f32 %v831_v14 }
 0x452   : > { %1742 = vrcp.f32 %v1000_v11 }
 0x454   : > { %v1004_v18 = vpop.permute.xlu0 %1003 }
 0x45e   : > { %v1741_v15 = vpop.eup %1740 }
 0x45f   : > { %v833_v16 = vmul.f32 %v1741_v15, %v1735_v1  ;;  %v1743_v17 = vpop.eup %1742 }
 0x460   : > { %v1002_v19 = vmul.f32 %v1743_v17, %v1733_v59 }
 0x461   : > { %1588 = vmatmul.mubr.msk.f32.vlgmr.msra.gmra.mxu1 %vm408_vm2, %v833_v16 }
 0x462   : > { %1596 = vmatpush3.msra.mxu1 %v1004_v18  ;;  %1597 = vmatprep.mubr.msk.f32.mxu1 %vm1906_vm1, %v1905_v4 }
 0x463   : > { %1611 = vmatprep.subr.mxu1 %v1905_v4 }
 0x465   : > { %1598 = vmatmul.mubr.msk.f32.vlgmr.msra.gmra.mxu1 %vm408_vm2, %v1002_v19 }
 0x466   : > { %1619 = vmatprep.mubr.msk.f32.mxu1 %vm1906_vm1, %v1905_v4  ;;  %1612 = vmatpush3.msra.mxu1 %v1185_v43 }
 0x467   : > { %1613 = vmatprep.subr.mxu1 %v1905_v4 }
 0x468   : > { %1614 = vmatpush3.msra.mxu1 %v1184_v44 }
 0x469   : > { %1615 = vmatprep.subr.mxu1 %v1905_v4 }
 0x46a   : > { %1616 = vmatpush3.msra.mxu1 %v1183_v45 }
 0x46b   : > { %1617 = vmatprep.subr.mxu1 %v1905_v4 }
 0x46c   : > { %1618 = vmatpush3.msra.mxu1 %v1182_v46 }
 0x4ec   : > { %v568_v21 = vpop.f32.mrf.mxu1 }
 0x4ee   : > { %v1569_v22 = vpop.f32.mrf.mxu1 }
 0x4f0   : > { %v737_v23 = vpop.f32.mrf.mxu1 }
 0x4f1   : > { %1080 = vrot.lane.b32.xlu1 %v737_v23, %s1918_s8  ;;  %s1836_s8 = scalar_lea.vmem %s1835_s20, 256 }
 0x4f2   : > { %v1579_v24 = vpop.f32.mrf.mxu1  ;;  %p1838_p7 = scmp.lt.s32.totalorder %s1836_s8, %s1830_s12 }
 0x4f4   : > { %p1839_p9 = por %p1838_p7, %p1837_p12 }
 0x4f6   : > { %p1840_p13 = pnand %p1839_p9, %p1833_p6 }
 0x521   : > { %v906_v28 = vpop.f32.mrf.mxu1 }
 0x522   : > { %1084 = vrot.lane.b32.xlu0 %v906_v28, %s1919_s14 }
 0x523   : > { %v1589_v29 = vpop.f32.mrf.mxu1 }
 0x525   : > { %v1075_v30 = vpop.f32.mrf.mxu1 }
 0x526   : > { %1088 = vrot.lane.b32.xlu1 %v1075_v30, %s1920_s26 }
 0x527   : > { %v1599_v31 = vpop.f32.mrf.mxu1 }
 0x563   : > { %v1081_v32 = vpop.permute.xlu1 %1080 }
 0x564   : > { %v1091_v34 = vsel %vm408_vm2, %v568_v21, %v1081_v32 }
 0x594   : > { %v1085_v33 = vpop.permute.xlu0 %1084 }
 0x595   : > { %v1093_v35 = vsel %vm1092_vm3, %v1091_v34, %v1085_v33 }
 0x598   : > { %v1089_v36 = vpop.permute.xlu1 %1088 }
 0x599   : > { %v1095_v37 = vsel %vm1094_vm4, %v1093_v35, %v1089_v36 }
 0x59a   : > { %1609 = vmatmul.mubr.msk.f32.vlgmr.msra.gmra.mxu0 %vm318_vm0, %v1095_v37 }
 0x59b   : > { %1638 = vmatprep.mubr.msk.f32.mxu0 %vm1906_vm1, %v1905_v4  ;;  %1623 = vmatpush3.msra.mxu0 %v1278_v51 }
 0x59c   : > { %1624 = vmatprep.subr.mxu0 %v1905_v4 }
 0x59d   : > { %1625 = vmatpush3.msra.mxu0 %v1277_v52 }
 0x59e   : > { %1626 = vmatprep.subr.mxu0 %v1905_v4 }
 0x59f   : > { %1627 = vmatpush3.msra.mxu0 %v1276_v53 }
 0x5a0   : > { %1628 = vmatprep.subr.mxu0 %v1905_v4 }
 0x5a1   : > { %1629 = vmatpush3.msra.mxu0 %v1275_v54 }
 0x5a2   : > { %1630 = vmatprep.subr.mxu0 %v1905_v4 }
 0x5a3   : > { %1631 = vmatpush3.msra.mxu0 %v1274_v55 }
 0x5a4   : > { %1632 = vmatprep.subr.mxu0 %v1905_v4 }
 0x5a5   : > { %1633 = vmatpush3.msra.mxu0 %v1273_v56 }
 0x5a6   : > { %1634 = vmatprep.subr.mxu0 %v1905_v4 }
 0x5a7   : > { %1635 = vmatpush3.msra.mxu0 %v1272_v57 }
 0x5a8   : > { %1636 = vmatprep.subr.mxu0 %v1905_v4 }
 0x5a9   : > { %1637 = vmatpush3.msra.mxu0 %v1271_v58 }
 0x65a   : > { %v1169_v38 = vpop.f32.mrf.mxu0 }
 0x65b   : > { %v2193_v39 = vadd.f32 %v1169_v38, %v2089_v0 }
 0x65c   : > { %v1610_v40 = vpop.f32.mrf.mxu0 }
 0x65d   : > { %v1174_v41 = vmul.f32 %v2193_v39, %v2193_v39 }
 0x65f   : > { %v1175_v42 = vsel %vm318_vm0, %v1174_v41, 0.0 }
 0x660   : > { %1176 = vadd.xlane.f32.xlu0 %v1175_v42 }
 0x6e9   : > { %v1177_v0 = vpop.xlane.xlu0 %1176 }
 0x6ea   : > { %v1178_v47 = vmul.f32 0.03125, %v1177_v0 }
 0x6ec   : > { %v1179_v48 = vadd.f32 1e-06, %v1178_v47 }
 0x6ee   : > { %1744 = vrsqrt.f32 %v1179_v48 }
 0x6fb   : > { %v1745_v49 = vpop.eup %1744 }
 0x6fc   : > { %v1181_v50 = vmul.f32 %v1745_v49, %v2193_v39 }
 0x6fe   : > { %1620 = vmatmul.mubr.msk.f32.vlgmr.msra.gmra.mxu1 %vm318_vm0, %v1181_v50 }
 0x7be   : > { %v1255_v59 = vpop.f32.mrf.mxu1 }
 0x7bf   : > { %1267 = vrot.lane.b32.xlu1 %v1255_v59, %s1915_s11  ;;  %v1502_v61 = vmul.f32 -1.442695, %v1255_v59 }
 0x7c0   : > { %v1621_v60 = vpop.f32.mrf.mxu1 }
 0x7c1   : > { %1746 = vpow2.f32 %v1502_v61 }
 0x7ce   : > { %v1747_v62 = vpop.eup %1746 }
 0x7cf   : > { %v1262_v63 = vadd.f32 1.0, %v1747_v62 }
 0x7d1   : > { %1748 = vrcp.f32 %v1262_v63 }
 0x7de   : > { %v1749_v1 = vpop.eup %1748 }
 0x7df   : > { %v1265_v2 = vmul.f32 %v1749_v1, %v1255_v59 }
 0x831   : > { %v1268_v4 = vpop.permute.xlu1 %1267 }
 0x832   : > { %v1270_v3 = vmul.f32 %v1268_v4, %v1265_v2 }
 0x834   : > { %1639 = vmatmul.mubr.msk.f32.vlgmr.msra.gmra.mxu0 %vm1279_vm5, %v1270_v3 }
 0x8f4   : > { %v1349_v5 = vpop.f32.mrf.mxu0 }
 0x8f5   : > { %v1353_v6 = vadd.f32 %v1349_v5, %v2193_v39 }
 0x8f6   : > { %v1640_v7 = vpop.f32.mrf.mxu0 }
 0x8f7   : > { %1354 = vst.msk [vmem:[%s310_s15] sm:$0xff] %vm318_vm0, %v1353_v6 }
 0x8f8   : > { %1843 = shalt.err (!%p1840_p13)
}
 0x8f9   : > { %s1844_s14 = scalar_lea.hbm %s2242_s10, 128  ;;  %s1848_s3 = scalar_lea.hbm %s2286_s6, 256 }
 0x8fa   : > { %p1845_p5 = scmp.ne.s32.totalorder %s2242_s10, %s1844_s14  ;;  %p1849_p8 = scmp.lt.s32.totalorder %s2242_s10, %s2286_s6 }
 0x8fb   : > { %p1850_p3 = scmp.lt.s32.totalorder %s1848_s3, %s1844_s14 }
 0x8fc   : > { %p1846_p10 = pnand %p1845_p5, %p2304_p1 }
 0x8fd   : > { %p1851_p11 = por %p1850_p3, %p1849_p8 }
 0x8fe   : > { %p1847_p4 = pneg %p1846_p10 }
 0x900   : > { %p1852_p0 = pnand %p1851_p11, %p1847_p4 }
 0x902   : > { %1855 = shalt.err (!%p1852_p0)
}
 0x903   : > { %1651 = dma.vmem_to_hbm [thread:$0]  (%p2304_p1), %s1370_s16, 128, %s2242_s10, %s1356_s9  }
 0x904 PF: > { %s1381_s27 = sand.u32 1, %s1886_s21   ;;  %p2305_p2 = scmp.ne.s32.totalorder %s2293_s28, 0 }
 0x905   : > { %p2306_p6 = scmp.ge.s32.totalorder %s1898_s24, 2  ;;  %s1382_s15 = scalar_lea.sflag [#allocation4], %s1381_s27 }
 0x907   : > { %p1665_p12 = pnand %p2306_p6, %p2305_p2 }
 0x909   : > { %p1666_p7 = pneg %p1665_p12 }
 0x90b   : > { %1881 = dma.done.wait (%p1666_p7), %s1382_s15, 128  }
 0x90c   : > { %1883 = vsyncadd (%p1666_p7), %s1382_s15, 4294967168  ;;  %p20_p9 = scmp.ge.s32.totalorder %s2029_s19, 4   ;;  %s2307_s21 = smov %s1890_s22 }
 0x90d   : > { %s2308_s22 = smov %s1894_s23  ;;  %s2309_s23 = smov %s2045_s7 }
 0x90e   : > { %s2310_s24 = smov %s2029_s19  ;;  %22 = sbr.rel (!%p20_p9) target bundleno = 8 (0x8), region = 103 }
 0x913   :  { %1387 = vsyncpa [#allocation3], 1 }
 0x914   :  { %1389 = vsyncpa [#allocation3 + $0x1], 1 }
 0x915   :  { %1390 = vsyncpa [#allocation6], 1 }
 0x916   :  { %1391 = vsyncpa [#allocation4], 1 }
 0x917   :  { %1393 = vsyncpa [#allocation4 + $0x1], 1 }

</bundles_post_ra>
